<compile_context>
chip_gen: v7x
topology: tpu7x:2x2x1
jax: 0.10.0
libtpu: 0.0.40
codegen_flags: <defaults>
</compile_context>

<pallas_src>
import jax
import jax.numpy as jnp
from jax.experimental import pallas as pl
from jax.experimental.pallas import tpu as pltpu

# ---- model hyper-parameters (small, consistent with the module defaults) ----
B      = 8        # batch (K % B == 0, as asserted in PyTorch)
D_IN   = 32       # input latent width fed to the base encoder (a single Linear)
DIM    = 64       # MoCo feature dim (semantic)
DIMP   = 128      # padded feature dim inside the kernel (fills 128 lanes)
K_Q    = 128      # queue length
M_MOM  = 0.999    # momentum coefficient
TEMP   = 0.2      # temperature

# ---- parameter-slab layout (one contiguous VMEM buffer per branch) ----------
ROW_WE    = 0                 # rows [0, D_IN)          : We^T   (D_IN, DIMP)
ROW_W1    = D_IN              # rows [32, 160)          : W1^T   (DIMP, DIMP)
ROW_W2    = D_IN + DIMP       # rows [160, 288)         : W2^T   (DIMP, DIMP)
ROW_B     = D_IN + 2 * DIMP   # rows [288, 296)         : biases be,b1,b2 + pad
SLAB_ROWS = ROW_B + 8         # 296 (8-aligned)

_VMEM = pl.BlockSpec(memory_space=pltpu.MemorySpace.VMEM)
_SMEM = pl.BlockSpec(memory_space=pltpu.MemorySpace.SMEM)


# ----------------------------------------------------------------------------
# Fused kernel
# ----------------------------------------------------------------------------
def moco_fused_kernel(
    # inputs
    x_ref, pq_ref, pk_ref, queue_t_ref, ptr_ref,
    # outputs
    logits_ref, pk_new_ref, queue_t_new_ref, ptr_new_ref,
):
    inv_t = jnp.float32(1.0 / TEMP)
    m = jnp.float32(M_MOM)
    one_m = jnp.float32(1.0 - M_MOM)

    def encode(x, p_ref):
        # encoder Linear -> MLP head (Linear, ReLU, Linear) -> row L2 normalize.
        # Static ref slices (8/128-aligned weight blocks, single-row biases).
        we = p_ref[ROW_WE:ROW_WE + D_IN, :]
        be = p_ref[ROW_B + 0:ROW_B + 1, :]
        w1 = p_ref[ROW_W1:ROW_W1 + DIMP, :]
        b1 = p_ref[ROW_B + 1:ROW_B + 2, :]
        w2 = p_ref[ROW_W2:ROW_W2 + DIMP, :]
        b2 = p_ref[ROW_B + 2:ROW_B + 3, :]
        f = jnp.dot(x, we, preferred_element_type=jnp.float32) + be
        h = jnp.maximum(
            jnp.dot(f, w1, preferred_element_type=jnp.float32) + b1, 0.0)
        z = jnp.dot(h, w2, preferred_element_type=jnp.float32) + b2
        ssq = jnp.sum(z * z, axis=1, keepdims=True)
        # F.normalize(z, dim=1): z / max(||z||, 1e-12) == z * rsqrt(max(ssq, 1e-24))
        return z * jax.lax.rsqrt(jnp.maximum(ssq, jnp.float32(1e-24)))

    # ---- query branch -------------------------------------------------------
    q = encode(x_ref[0:B, :], pq_ref)

    # ---- momentum EMA of the whole key-param slab (in-place via aliasing) ----
    pk_new_ref[...] = m * pk_ref[...] + one_m * pq_ref[...]

    # ---- key branch with the *updated* key params ----------------------------
    k = encode(x_ref[B:2 * B, :], pk_new_ref)

    # ---- InfoNCE logits, packed lane-aligned: [l_neg | l_pos broadcast] ------
    l_neg = jnp.dot(q, queue_t_ref[...], preferred_element_type=jnp.float32)
    l_pos = jnp.sum(q * k, axis=1, keepdims=True)
    logits_ref[:, 0:K_Q] = l_neg * inv_t
    logits_ref[:, K_Q:2 * K_Q] = jnp.broadcast_to(l_pos * inv_t, (B, K_Q))

    # ---- dequeue & enqueue: queue_t[:, ptr:ptr+B] <- k^T ---------------------
    # (ptr is a multiple of B and K_Q % B == 0, matching the PyTorch assert, so
    #  the write never wraps.)  One-hot scatter matmul contracting the batch
    #  axis of k directly (no explicit transpose) + select.
    ptr = ptr_ref[0]
    row = jax.lax.broadcasted_iota(jnp.int32, (B, K_Q), 0)
    col = jax.lax.broadcasted_iota(jnp.int32, (B, K_Q), 1)
    sel = (col == ptr + row).astype(jnp.float32)                    # (B, K_Q)
    scatter = jax.lax.dot_general(                                   # (DIMP, K_Q)
        k, sel, dimension_numbers=(((0,), (0,)), ((), ())),
        preferred_element_type=jnp.float32)
    colq = jax.lax.broadcasted_iota(jnp.int32, (DIMP, K_Q), 1)
    keep = (colq < ptr) | (colq >= ptr + B)
    queue_t_new_ref[...] = jnp.where(keep, queue_t_ref[...], scatter)

    # ---- queue pointer update ------------------------------------------------
    ptr_new_ref[0] = jax.lax.rem(ptr + jnp.int32(B), jnp.int32(K_Q))


# ----------------------------------------------------------------------------
# Wrapper
# ----------------------------------------------------------------------------
_FLOPS = int(
    2 * (2 * B * D_IN * DIMP + 2 * 2 * B * DIMP * DIMP)   # two encoder branches
    + 2 * B * DIMP * K_Q                                   # l_neg matmul
    + 2 * B * DIMP * K_Q                                   # enqueue scatter matmul
    + 3 * SLAB_ROWS * DIMP                                 # EMA + elementwise
)
_BYTES = int(4 * (2 * B * D_IN            # merged x
                  + 3 * SLAB_ROWS * DIMP  # q slab in, k slab in + out
                  + 2 * DIMP * K_Q        # queue in + out
                  + B * 2 * K_Q) + 8)     # packed logits out + ptr
_TRANS = 2 * B


def moco_forward(pq_slab, pk_slab, queue_t, queue_ptr, x):
    """pq_slab/pk_slab: (SLAB_ROWS, DIMP) packed params; queue_t: (DIMP, K_Q);
    x: (2*B, D_IN) with rows [0,B)=x_q, [B,2B)=x_k."""
    logits_packed, pk_new, queue_t_new, ptr_new = pl.pallas_call(
        moco_fused_kernel,
        out_shape=(
            jax.ShapeDtypeStruct((B, 2 * K_Q), jnp.float32),       # [l_neg | l_pos]/T
            jax.ShapeDtypeStruct((SLAB_ROWS, DIMP), jnp.float32),  # new key-param slab
            jax.ShapeDtypeStruct((DIMP, K_Q), jnp.float32),        # new queue^T
            jax.ShapeDtypeStruct((1,), jnp.int32),                 # new queue_ptr
        ),
        in_specs=[_VMEM, _VMEM, _VMEM, _VMEM, _SMEM],
        out_specs=(_VMEM, _VMEM, _VMEM, _SMEM),
        # key-param slab (input 2) -> output 1, queue (input 3) -> output 2;
        # in-place when the caller donates the state buffers.
        input_output_aliases={2: 1, 3: 2},
        cost_estimate=pl.CostEstimate(
            flops=_FLOPS, transcendentals=_TRANS, bytes_accessed=_BYTES),
    )(x, pq_slab, pk_slab, queue_t, queue_ptr)

    # PyTorch layout: logits = cat([l_pos, l_neg], dim=1) / T ; labels = 0
    logits = jnp.concatenate(
        [logits_packed[:, K_Q:K_Q + 1], logits_packed[:, :K_Q]], axis=1)
    labels = jnp.zeros((B,), dtype=jnp.int32)
    return logits, labels, pk_new, queue_t_new, ptr_new


# ----------------------------------------------------------------------------
# Parameter / state construction (PyTorch layout -> packed, padded TPU slab)
# ----------------------------------------------------------------------------
def make_params(key):
    ks = jax.random.split(key, 6)
    scale = 0.05
    return {
        "We": scale * jax.random.normal(ks[0], (DIM, D_IN), jnp.float32),
        "be": scale * jax.random.normal(ks[1], (DIM,), jnp.float32),
        "W1": scale * jax.random.normal(ks[2], (DIM, DIM), jnp.float32),
        "b1": scale * jax.random.normal(ks[3], (DIM,), jnp.float32),
        "W2": scale * jax.random.normal(ks[4], (DIM, DIM), jnp.float32),
        "b2": scale * jax.random.normal(ks[5], (DIM,), jnp.float32),
    }


def prepare_branch_slab(params):
    """Pack transposed / zero-padded weights + biases into one (296, 128) slab."""
    slab = jnp.zeros((SLAB_ROWS, DIMP), jnp.float32)
    slab = slab.at[ROW_WE:ROW_WE + D_IN, :DIM].set(params["We"].T)
    slab = slab.at[ROW_W1:ROW_W1 + DIM, :DIM].set(params["W1"].T)
    slab = slab.at[ROW_W2:ROW_W2 + DIM, :DIM].set(params["W2"].T)
    slab = slab.at[ROW_B + 0, :DIM].set(params["be"])
    slab = slab.at[ROW_B + 1, :DIM].set(params["b1"])
    slab = slab.at[ROW_B + 2, :DIM].set(params["b2"])
    return slab


if __name__ == "__main__":
    assert K_Q % B == 0  # PyTorch assert; guarantees the in-kernel enqueue never wraps

    root = jax.random.PRNGKey(0)
    k_pq, k_queue, k_xq, k_xk = jax.random.split(root, 4)

    # encoder_k / head_k start as a deepcopy of the query branch
    params_q = make_params(k_pq)
    params_k = jax.tree_util.tree_map(lambda p: p.copy(), params_q)

    # queue buffer: F.normalize(randn(K, dim), dim=1), stored transposed + padded
    raw = jax.random.normal(k_queue, (K_Q, DIM), jnp.float32)
    queue = raw / jnp.maximum(
        jnp.sqrt(jnp.sum(raw * raw, axis=1, keepdims=True)), 1e-12)
    queue_ptr = jnp.zeros((1,), dtype=jnp.int32)

    x_q = jax.random.normal(k_xq, (B, D_IN), jnp.float32)
    x_k = jax.random.normal(k_xk, (B, D_IN), jnp.float32)
    x = jnp.concatenate([x_q, x_k], axis=0)          # (2B, D_IN)

    pq_slab = prepare_branch_slab(params_q)
    pk_slab = prepare_branch_slab(params_k)
    queue_t = jnp.zeros((DIMP, K_Q), jnp.float32).at[:DIM, :].set(queue.T)

    # Donate the key-param slab and the queue so input_output_aliases is truly
    # in-place (no defensive copies of the state every step).
    fwd = jax.jit(moco_forward, donate_argnums=(1, 2))
    logits, labels, new_pk, new_queue_t, new_ptr = fwd(
        pq_slab, pk_slab, queue_t, queue_ptr, x)
    jax.block_until_ready((logits, labels, new_pk, new_queue_t, new_ptr))

    # ---------------- pure-JAX reference (PyTorch semantics) ----------------
    hp = jax.lax.Precision.HIGHEST

    def ref_enc(xv, p):
        f = jnp.dot(xv, p["We"].T, precision=hp) + p["be"]
        h = jnp.maximum(jnp.dot(f, p["W1"].T, precision=hp) + p["b1"], 0.0)
        z = jnp.dot(h, p["W2"].T, precision=hp) + p["b2"]
        n = jnp.sqrt(jnp.sum(z * z, axis=1, keepdims=True))
        return z / jnp.maximum(n, 1e-12)

    q_ref = ref_enc(x_q, params_q)
    pk_ref = jax.tree_util.tree_map(
        lambda a, b: M_MOM * a + (1.0 - M_MOM) * b, params_k, params_q)
    k_ref = ref_enc(x_k, pk_ref)
    l_pos_ref = jnp.sum(q_ref * k_ref, axis=1, keepdims=True)
    l_neg_ref = jnp.dot(q_ref, queue.T, precision=hp)
    logits_ref = jnp.concatenate([l_pos_ref, l_neg_ref], axis=1) / TEMP
    queue_ref = queue.at[0:B].set(k_ref)   # ptr starts at 0

    assert logits.shape == (B, 1 + K_Q) and logits.dtype == jnp.float32
    assert bool(jnp.all(jnp.isfinite(logits)))
    assert jnp.allclose(logits, logits_ref, atol=2e-4, rtol=2e-4)
    new_queue = new_queue_t[:DIM, :].T
    assert jnp.allclose(new_queue, queue_ref, atol=2e-4, rtol=2e-4)
    assert jnp.allclose(new_pk[ROW_WE:ROW_WE + D_IN, :DIM].T, pk_ref["We"],
                        atol=1e-6, rtol=1e-6)
    assert jnp.allclose(new_pk[ROW_B, :DIM], pk_ref["be"], atol=1e-6, rtol=1e-6)
    assert labels.shape == (B,) and int(labels.sum()) == 0
    assert int(new_ptr[0]) == B % K_Q

    print("KERNEL_OK")
</pallas_src>

<mosaic_0001>
module attributes {stable_mosaic.version = 11 : i64} {
  func.func @moco_fused_kernel(%arg0: memref<16x32xf32, #tpu.memory_space<vmem>>, %arg1: memref<296x128xf32, #tpu.memory_space<vmem>>, %arg2: memref<296x128xf32, #tpu.memory_space<vmem>>, %arg3: memref<128x128xf32, #tpu.memory_space<vmem>>, %arg4: memref<1xi32, #tpu.memory_space<smem>>, %arg5: memref<8x256xf32, #tpu.memory_space<vmem>>, %arg6: memref<296x128xf32, #tpu.memory_space<vmem>>, %arg7: memref<128x128xf32, #tpu.memory_space<vmem>>, %arg8: memref<1xi32, #tpu.memory_space<smem>>) attributes {dimension_semantics = [], scalar_prefetch = 0 : i64, scratch_operands = 0 : i64, tpu.core_type = #tpu.core_type<tc>} {
    %c0 = arith.constant 0 : index
    %c0_0 = arith.constant 0 : index
    %0 = vector.load %arg0[%c0, %c0_0] : memref<16x32xf32, #tpu.memory_space<vmem>>, vector<8x32xf32>
    %c0_1 = arith.constant 0 : index
    %c0_2 = arith.constant 0 : index
    %1 = vector.load %arg1[%c0_1, %c0_2] : memref<296x128xf32, #tpu.memory_space<vmem>>, vector<32x128xf32>
    %c288 = arith.constant 288 : index
    %c0_3 = arith.constant 0 : index
    %2 = vector.load %arg1[%c288, %c0_3] : memref<296x128xf32, #tpu.memory_space<vmem>>, vector<1x128xf32>
    %c32 = arith.constant 32 : index
    %c0_4 = arith.constant 0 : index
    %3 = vector.load %arg1[%c32, %c0_4] : memref<296x128xf32, #tpu.memory_space<vmem>>, vector<128x128xf32>
    %c289 = arith.constant 289 : index
    %c0_5 = arith.constant 0 : index
    %4 = vector.load %arg1[%c289, %c0_5] : memref<296x128xf32, #tpu.memory_space<vmem>>, vector<1x128xf32>
    %c160 = arith.constant 160 : index
    %c0_6 = arith.constant 0 : index
    %5 = vector.load %arg1[%c160, %c0_6] : memref<296x128xf32, #tpu.memory_space<vmem>>, vector<128x128xf32>
    %c290 = arith.constant 290 : index
    %c0_7 = arith.constant 0 : index
    %6 = vector.load %arg1[%c290, %c0_7] : memref<296x128xf32, #tpu.memory_space<vmem>>, vector<1x128xf32>
    %cst = arith.constant dense<0.000000e+00> : vector<8x128xf32>
    %7 = tpu.matmul %0, %1, %cst {dimension_numbers = #tpu.dot_dimension_numbers<[1], [0], [0], [1], [0, 0, 1, 1], [], []>} : vector<8x32xf32>, vector<32x128xf32>, vector<8x128xf32> -> vector<8x128xf32>
    %8 = vector.broadcast %2 : vector<1x128xf32> to vector<8x128xf32>
    %9 = arith.addf %7, %8 : vector<8x128xf32>
    %cst_8 = arith.constant dense<0.000000e+00> : vector<8x128xf32>
    %10 = tpu.matmul %9, %3, %cst_8 {dimension_numbers = #tpu.dot_dimension_numbers<[1], [0], [0], [1], [0, 0, 1, 1], [], []>} : vector<8x128xf32>, vector<128x128xf32>, vector<8x128xf32> -> vector<8x128xf32>
    %11 = vector.broadcast %4 : vector<1x128xf32> to vector<8x128xf32>
    %12 = arith.addf %10, %11 : vector<8x128xf32>
    %cst_9 = arith.constant 0.000000e+00 : f32
    %13 = vector.broadcast %cst_9 : f32 to vector<8x128xf32>
    %14 = arith.maximumf %12, %13 : vector<8x128xf32>
    %cst_10 = arith.constant dense<0.000000e+00> : vector<8x128xf32>
    %15 = tpu.matmul %14, %5, %cst_10 {dimension_numbers = #tpu.dot_dimension_numbers<[1], [0], [0], [1], [0, 0, 1, 1], [], []>} : vector<8x128xf32>, vector<128x128xf32>, vector<8x128xf32> -> vector<8x128xf32>
    %16 = vector.broadcast %6 : vector<1x128xf32> to vector<8x128xf32>
    %17 = arith.addf %15, %16 : vector<8x128xf32>
    %18 = arith.mulf %17, %17 : vector<8x128xf32>
    %cst_11 = arith.constant dense<0.000000e+00> : vector<8xf32>
    %19 = vector.multi_reduction <add>, %18, %cst_11 [1] : vector<8x128xf32> to vector<8xf32>
    %20 = vector.shape_cast %19 : vector<8xf32> to vector<8x1xf32>
    %cst_12 = arith.constant 1.000000e-24 : f32
    %21 = vector.broadcast %cst_12 : f32 to vector<8x1xf32>
    %22 = arith.maximumf %20, %21 : vector<8x1xf32>
    %23 = math.rsqrt %22 : vector<8x1xf32>
    %24 = vector.broadcast %23 : vector<8x1xf32> to vector<8x128xf32>
    %25 = arith.mulf %17, %24 : vector<8x128xf32>
    %c0_13 = arith.constant 0 : index
    %c0_14 = arith.constant 0 : index
    %26 = vector.load %arg2[%c0_13, %c0_14] : memref<296x128xf32, #tpu.memory_space<vmem>>, vector<296x128xf32>
    %cst_15 = arith.constant 9.990000e-01 : f32
    %27 = vector.broadcast %cst_15 : f32 to vector<296x128xf32>
    %28 = arith.mulf %27, %26 : vector<296x128xf32>
    %c0_16 = arith.constant 0 : index
    %c0_17 = arith.constant 0 : index
    %29 = vector.load %arg1[%c0_16, %c0_17] : memref<296x128xf32, #tpu.memory_space<vmem>>, vector<296x128xf32>
    %cst_18 = arith.constant 1.000000e-03 : f32
    %30 = vector.broadcast %cst_18 : f32 to vector<296x128xf32>
    %31 = arith.mulf %30, %29 : vector<296x128xf32>
    %32 = arith.addf %28, %31 : vector<296x128xf32>
    %c0_19 = arith.constant 0 : index
    %c0_20 = arith.constant 0 : index
    %33 = vector.load %arg6[%c0_19, %c0_20] : memref<296x128xf32, #tpu.memory_space<vmem>>, vector<296x128xf32>
    tpu.vector_store %arg6[%c0_19, %c0_20], %32 {strides = array<i32>} : memref<296x128xf32, #tpu.memory_space<vmem>>, vector<296x128xf32>,
    %c8 = arith.constant 8 : index
    %c0_21 = arith.constant 0 : index
    %34 = vector.load %arg0[%c8, %c0_21] : memref<16x32xf32, #tpu.memory_space<vmem>>, vector<8x32xf32>
    %c0_22 = arith.constant 0 : index
    %c0_23 = arith.constant 0 : index
    %35 = vector.load %arg6[%c0_22, %c0_23] : memref<296x128xf32, #tpu.memory_space<vmem>>, vector<32x128xf32>
    %c288_24 = arith.constant 288 : index
    %c0_25 = arith.constant 0 : index
    %36 = vector.load %arg6[%c288_24, %c0_25] : memref<296x128xf32, #tpu.memory_space<vmem>>, vector<1x128xf32>
    %c32_26 = arith.constant 32 : index
    %c0_27 = arith.constant 0 : index
    %37 = vector.load %arg6[%c32_26, %c0_27] : memref<296x128xf32, #tpu.memory_space<vmem>>, vector<128x128xf32>
    %c289_28 = arith.constant 289 : index
    %c0_29 = arith.constant 0 : index
    %38 = vector.load %arg6[%c289_28, %c0_29] : memref<296x128xf32, #tpu.memory_space<vmem>>, vector<1x128xf32>
    %c160_30 = arith.constant 160 : index
    %c0_31 = arith.constant 0 : index
    %39 = vector.load %arg6[%c160_30, %c0_31] : memref<296x128xf32, #tpu.memory_space<vmem>>, vector<128x128xf32>
    %c290_32 = arith.constant 290 : index
    %c0_33 = arith.constant 0 : index
    %40 = vector.load %arg6[%c290_32, %c0_33] : memref<296x128xf32, #tpu.memory_space<vmem>>, vector<1x128xf32>
    %cst_34 = arith.constant dense<0.000000e+00> : vector<8x128xf32>
    %41 = tpu.matmul %34, %35, %cst_34 {dimension_numbers = #tpu.dot_dimension_numbers<[1], [0], [0], [1], [0, 0, 1, 1], [], []>} : vector<8x32xf32>, vector<32x128xf32>, vector<8x128xf32> -> vector<8x128xf32>
    %42 = vector.broadcast %36 : vector<1x128xf32> to vector<8x128xf32>
    %43 = arith.addf %41, %42 : vector<8x128xf32>
    %cst_35 = arith.constant dense<0.000000e+00> : vector<8x128xf32>
    %44 = tpu.matmul %43, %37, %cst_35 {dimension_numbers = #tpu.dot_dimension_numbers<[1], [0], [0], [1], [0, 0, 1, 1], [], []>} : vector<8x128xf32>, vector<128x128xf32>, vector<8x128xf32> -> vector<8x128xf32>
    %45 = vector.broadcast %38 : vector<1x128xf32> to vector<8x128xf32>
    %46 = arith.addf %44, %45 : vector<8x128xf32>
    %cst_36 = arith.constant 0.000000e+00 : f32
    %47 = vector.broadcast %cst_36 : f32 to vector<8x128xf32>
    %48 = arith.maximumf %46, %47 : vector<8x128xf32>
    %cst_37 = arith.constant dense<0.000000e+00> : vector<8x128xf32>
    %49 = tpu.matmul %48, %39, %cst_37 {dimension_numbers = #tpu.dot_dimension_numbers<[1], [0], [0], [1], [0, 0, 1, 1], [], []>} : vector<8x128xf32>, vector<128x128xf32>, vector<8x128xf32> -> vector<8x128xf32>
    %50 = vector.broadcast %40 : vector<1x128xf32> to vector<8x128xf32>
    %51 = arith.addf %49, %50 : vector<8x128xf32>
    %52 = arith.mulf %51, %51 : vector<8x128xf32>
    %cst_38 = arith.constant dense<0.000000e+00> : vector<8xf32>
    %53 = vector.multi_reduction <add>, %52, %cst_38 [1] : vector<8x128xf32> to vector<8xf32>
    %54 = vector.shape_cast %53 : vector<8xf32> to vector<8x1xf32>
    %cst_39 = arith.constant 1.000000e-24 : f32
    %55 = vector.broadcast %cst_39 : f32 to vector<8x1xf32>
    %56 = arith.maximumf %54, %55 : vector<8x1xf32>
    %57 = math.rsqrt %56 : vector<8x1xf32>
    %58 = vector.broadcast %57 : vector<8x1xf32> to vector<8x128xf32>
    %59 = arith.mulf %51, %58 : vector<8x128xf32>
    %c0_40 = arith.constant 0 : index
    %c0_41 = arith.constant 0 : index
    %60 = vector.load %arg3[%c0_40, %c0_41] : memref<128x128xf32, #tpu.memory_space<vmem>>, vector<128x128xf32>
    %cst_42 = arith.constant dense<0.000000e+00> : vector<8x128xf32>
    %61 = tpu.matmul %25, %60, %cst_42 {dimension_numbers = #tpu.dot_dimension_numbers<[1], [0], [0], [1], [0, 0, 1, 1], [], []>} : vector<8x128xf32>, vector<128x128xf32>, vector<8x128xf32> -> vector<8x128xf32>
    %62 = arith.mulf %25, %59 : vector<8x128xf32>
    %cst_43 = arith.constant dense<0.000000e+00> : vector<8xf32>
    %63 = vector.multi_reduction <add>, %62, %cst_43 [1] : vector<8x128xf32> to vector<8xf32>
    %64 = vector.shape_cast %63 : vector<8xf32> to vector<8x1xf32>
    %cst_44 = arith.constant 5.000000e+00 : f32
    %65 = vector.broadcast %cst_44 : f32 to vector<8x128xf32>
    %66 = arith.mulf %61, %65 : vector<8x128xf32>
    %c0_45 = arith.constant 0 : index
    %c0_46 = arith.constant 0 : index
    %67 = vector.load %arg5[%c0_45, %c0_46] : memref<8x256xf32, #tpu.memory_space<vmem>>, vector<8x128xf32>
    tpu.vector_store %arg5[%c0_45, %c0_46], %66 {strides = array<i32>} : memref<8x256xf32, #tpu.memory_space<vmem>>, vector<8x128xf32>,
    %cst_47 = arith.constant 5.000000e+00 : f32
    %68 = vector.broadcast %cst_47 : f32 to vector<8x1xf32>
    %69 = arith.mulf %64, %68 : vector<8x1xf32>
    %70 = vector.shape_cast %69 : vector<8x1xf32> to vector<8x1xf32>
    %71 = vector.broadcast %70 : vector<8x1xf32> to vector<8x128xf32>
    %c0_48 = arith.constant 0 : index
    %c128 = arith.constant 128 : index
    %72 = vector.load %arg5[%c0_48, %c128] : memref<8x256xf32, #tpu.memory_space<vmem>>, vector<8x128xf32>
    tpu.vector_store %arg5[%c0_48, %c128], %71 {strides = array<i32>} : memref<8x256xf32, #tpu.memory_space<vmem>>, vector<8x128xf32>,
    %c0_49 = arith.constant 0 : index
    %73 = memref.load %arg4[%c0_49] : memref<1xi32, #tpu.memory_space<smem>>
    %74 = tpu.iota {dimensions = array<i32: 0>} : vector<8x128xi32>
    %75 = tpu.iota {dimensions = array<i32: 1>} : vector<8x128xi32>
    %76 = vector.broadcast %73 : i32 to vector<8x128xi32>
    %77 = arith.addi %76, %74 : vector<8x128xi32>
    %78 = arith.cmpi eq, %75, %77 : vector<8x128xi32>
    %79 = arith.extui %78 : vector<8x128xi1> to vector<8x128xi32>
    %80 = arith.sitofp %79 : vector<8x128xi32> to vector<8x128xf32>
    %cst_50 = arith.constant dense<0.000000e+00> : vector<128x128xf32>
    %81 = tpu.matmul %59, %80, %cst_50 {dimension_numbers = #tpu.dot_dimension_numbers<[0], [0], [1], [1], [0, 1, 1, 1], [], []>} : vector<8x128xf32>, vector<8x128xf32>, vector<128x128xf32> -> vector<128x128xf32>
    %82 = tpu.iota {dimensions = array<i32: 1>} : vector<128x128xi32>
    %83 = vector.broadcast %73 : i32 to vector<128x128xi32>
    %84 = arith.cmpi slt, %82, %83 : vector<128x128xi32>
    %c8_i32 = arith.constant 8 : i32
    %85 = arith.addi %73, %c8_i32 : i32
    %86 = vector.broadcast %85 : i32 to vector<128x128xi32>
    %87 = arith.cmpi sge, %82, %86 : vector<128x128xi32>
    %88 = arith.ori %84, %87 : vector<128x128xi1>
    %c0_51 = arith.constant 0 : index
    %c0_52 = arith.constant 0 : index
    %89 = vector.load %arg3[%c0_51, %c0_52] : memref<128x128xf32, #tpu.memory_space<vmem>>, vector<128x128xf32>
    %90 = arith.select %88, %89, %81 : vector<128x128xi1>, vector<128x128xf32>
    %c0_53 = arith.constant 0 : index
    %c0_54 = arith.constant 0 : index
    %91 = vector.load %arg7[%c0_53, %c0_54] : memref<128x128xf32, #tpu.memory_space<vmem>>, vector<128x128xf32>
    tpu.vector_store %arg7[%c0_53, %c0_54], %90 {strides = array<i32>} : memref<128x128xf32, #tpu.memory_space<vmem>>, vector<128x128xf32>,
    %c8_i32_55 = arith.constant 8 : i32
    %92 = arith.addi %73, %c8_i32_55 : i32
    %c128_i32 = arith.constant 128 : i32
    %93 = arith.remsi %92, %c128_i32 : i32
    %c0_56 = arith.constant 0 : index
    %94 = memref.load %arg8[%c0_56] : memref<1xi32, #tpu.memory_space<smem>>
    memref.store %93, %arg8[%c0_56] : memref<1xi32, #tpu.memory_space<smem>>
    return
  }
}

</mosaic_0001>

<bundles_post_ra>
// kernel: moco_forward.1
= control target key start
LH: loop header
LB: loop body
LE: loop exit
PB: predicated region body
PF: predicated region fallthrough
CT: control target
= control target key end

     0   :  { %15 = vsyncpa [#allocation4], 0  ;;  %s2496_s0 = inlined_call_operand.hbm [shape: f32[16,32], index: 0, kind: input, shape index: {}]   ;;  %s2497_s1 = inlined_call_operand.hbm [shape: f32[296,128], index: 1, kind: input, shape index: {}]   ;;  %s2498_s2 = inlined_call_operand.hbm [shape: f32[296,128], index: 2, kind: input, shape index: {}, may-alias: {2,6}]   ;;  %s2499_s3 = inlined_call_operand.hbm [shape: f32[128,128], index: 3, kind: input, shape index: {}, may-alias: {3,7}]   ;;  %s2500_s4 = inlined_call_operand.<no memory space> [shape: s32[1], index: 4, kind: input, shape index: {}]   ;;  %s2501_s5 = inlined_call_operand.vmem [shape: f32[8,256], index: 5, kind: output, shape index: {0}]   ;;  %s2502_s6 = inlined_call_operand.hbm [shape: f32[296,128], index: 6, kind: output, shape index: {1}, may-alias: {2,6}]   ;;  %s2503_s7 = inlined_call_operand.hbm [shape: f32[128,128], index: 7, kind: output, shape index: {2}, may-alias: {3,7}]   ;;  %s2504_s8 = inlined_call_operand.hbm [shape: s32[1], index: 8, kind: output, shape index: {3}]  }
   0x1   :  { %16 = vsyncpa [#allocation8], 0 }
   0x2   :  { %17 = vsyncpa [#allocation11], 0 }
   0x3   :  { %18 = vsyncpa [#allocation5], 0 }
   0x4   :  { %19 = vsyncpa [#allocation14], 0 }
   0x5   :  { %20 = vsyncpa [#allocation6], 0  ;;  %s1957_s27 = smov [#allocation7]   ;;  %s1958_s29 = smov [#allocation3]  }
   0x6   :  { %s38_s28 = sshll.u32 %s1957_s27, 4  ;;  %s26_s30 = sshll.u32 %s1958_s29, 4  ;;  %s39_s28 = int_to_ptr.vmem [resolvable:$true] %s38_s28  ;;  %s2015_s30 = int_to_ptr.vmem [resolvable:$true] %s26_s30 }
   0x7   :  { %s1803_s11 = scalar_lea.hbm %s2497_s1, 4736 }
   0x8   :  { %p1804_p0 = scmp.ne.s32.totalorder %s2497_s1, %s1803_s11  ;;  %p1807_p1 = scmp.lt.u32.totalorder %s1803_s11, %s2497_s1 }
   0xa   :  { %p1809_p2 = pnand %p1807_p1, %p1804_p0 }
   0xc   :  { %1812 = shalt.err (!%p1809_p2)
}
   0xd   :  { %s1813_s16 = scalar_lea.vmem %s39_s28, 4736  ;;  %p1818_p4 = scmp.lt.s32.totalorder %s39_s28, %s39_s28 }
   0xe   :  { %p1814_p3 = scmp.ne.s32.totalorder %s39_s28, %s1813_s16  ;;  %p1819_p5 = scmp.lt.s32.totalorder %s1813_s16, %s1813_s16 }
  0x10   :  { %p1820_p6 = por %p1819_p5, %p1818_p4 }
  0x12   :  { %p1821_p7 = pnand %p1820_p6, %p1814_p3 }
  0x14   :  { %1824 = shalt.err (!%p1821_p7)
}
  0x15   :  { %s1959_s17 = smov 128   ;;  %s1960_s18 = smov 8  }
  0x16   :  { %44 = dma.hbm_to_vmem [thread:$0]  %s2497_s1, 4736, %s39_s28, [#allocation8], %s1959_s17, %s1959_s17, %s1960_s18  }
  0x17   :  { %s1825_s23 = scalar_lea.hbm %s2496_s0, 256 }
  0x18   :  { %p1826_p8 = scmp.ne.s32.totalorder %s2496_s0, %s1825_s23  ;;  %p1829_p9 = scmp.lt.u32.totalorder %s1825_s23, %s2496_s0 }
  0x1a   :  { %p1831_p10 = pnand %p1829_p9, %p1826_p8 }
  0x1c   :  { %1834 = shalt.err (!%p1831_p10)
}
  0x1d   :  { %s1835_s29 = scalar_lea.vmem %s2015_s30, 256  ;;  %p1840_p12 = scmp.lt.s32.totalorder %s2015_s30, %s2015_s30 }
  0x1e   :  { %p1836_p11 = scmp.ne.s32.totalorder %s2015_s30, %s1835_s29  ;;  %p1841_p13 = scmp.lt.s32.totalorder %s1835_s29, %s1835_s29 }
  0x20   :  { %p1842_p0 = por %p1841_p13, %p1840_p12 }
  0x22   :  { %p1843_p1 = pnand %p1842_p0, %p1836_p11 }
  0x24   :  { %1846 = shalt.err (!%p1843_p1)
}
  0x25   :  { %32 = dma.hbm_to_vmem [thread:$0]  %s2496_s0, 256, %s2015_s30, [#allocation4], %s1959_s17, %s1959_s17, %s1960_s18  }
  0x26   :  { %s1961_s9 = smov [#allocation9]   ;;  %s1962_s11 = smov [#allocation10]  }
  0x27   :  { %s50_s10 = sshll.u32 %s1961_s9, 4  ;;  %s62_s12 = sshll.u32 %s1962_s11, 4  ;;  %s51_s10 = int_to_ptr.vmem [resolvable:$true] %s50_s10  ;;  %s2052_s12 = int_to_ptr.vmem [resolvable:$true] %s62_s12 }
  0x28   :  { %s1847_s15 = scalar_lea.hbm %s2498_s2, 4736 }
  0x29   :  { %p1848_p2 = scmp.ne.s32.totalorder %s2498_s2, %s1847_s15  ;;  %p1851_p3 = scmp.lt.u32.totalorder %s1847_s15, %s2498_s2 }
  0x2b   :  { %p1853_p4 = pnand %p1851_p3, %p1848_p2 }
  0x2d   :  { %1856 = shalt.err (!%p1853_p4)
}
  0x2e   :  { %s1857_s0 = scalar_lea.vmem %s51_s10, 4736  ;;  %p1862_p6 = scmp.lt.s32.totalorder %s51_s10, %s51_s10 }
  0x2f   :  { %p1858_p5 = scmp.ne.s32.totalorder %s51_s10, %s1857_s0  ;;  %p1863_p7 = scmp.lt.s32.totalorder %s1857_s0, %s1857_s0 }
  0x31   :  { %p1864_p8 = por %p1863_p7, %p1862_p6 }
  0x33   :  { %p1865_p9 = pnand %p1864_p8, %p1858_p5 }
  0x35   :  { %1868 = shalt.err (!%p1865_p9)
}
  0x36   :  { %56 = dma.hbm_to_vmem [thread:$0]  %s2498_s2, 4736, %s51_s10, [#allocation8], %s1959_s17, %s1959_s17, %s1960_s18  }
  0x37   :  { %s1869_s25 = scalar_lea.hbm %s2499_s3, 2048 }
  0x38   :  { %p1870_p10 = scmp.ne.s32.totalorder %s2499_s3, %s1869_s25  ;;  %p1873_p11 = scmp.lt.u32.totalorder %s1869_s25, %s2499_s3 }
  0x3a   :  { %p1875_p12 = pnand %p1873_p11, %p1870_p10 }
  0x3c   :  { %1878 = shalt.err (!%p1875_p12)
}
  0x3d   :  { %s1879_s28 = scalar_lea.vmem %s2052_s12, 2048  ;;  %p1884_p0 = scmp.lt.s32.totalorder %s2052_s12, %s2052_s12 }
  0x3e   :  { %p1880_p13 = scmp.ne.s32.totalorder %s2052_s12, %s1879_s28  ;;  %p1885_p1 = scmp.lt.s32.totalorder %s1879_s28, %s1879_s28 }
  0x40   :  { %p1886_p2 = por %p1885_p1, %p1884_p0 }
  0x42   :  { %p1887_p3 = pnand %p1886_p2, %p1880_p13 }
  0x44   :  { %1890 = shalt.err (!%p1887_p3)
}
  0x45   :  { %68 = dma.hbm_to_vmem [thread:$0]  %s2499_s3, 2048, %s2052_s12, [#allocation11], %s1959_s17, %s1959_s17, %s1960_s18  }
  0x46   :  { %1945 = dma.done.wait [#allocation4], 256  }
  0x47   :  { %1946 = vsyncadd [#allocation4], 4294967040 }
  0x48   :  { %1947 = dma.done.wait [#allocation8], 9472  }
  0x49   :  { %1948 = vsyncadd [#allocation8], 4294957824 }
  0x4a   :  { %1949 = dma.done.wait [#allocation11], 2048  }
  0x4b   :  { %1950 = vsyncadd [#allocation11], 4294965248  ;;  %v1963_v0 = vmov 0.0|0.0   ;;  %vm1964_vm0 = vmmov 0   ;;  %v1965_v1 = vmov 0.0   ;;  %v84_v2 = vld [vmem:[#allocation7] sm:$0xff] }
  0x4c   :  { %1654 = vmatprep.subr.bf16.mxu0 %v1963_v0  ;;  %1439 = vmatprep.mubr.msk.f32.mxu0 %vm1964_vm0, %v1965_v1  ;;  %v85_v3 = vld [vmem:[#allocation7 + $0x8] sm:$0xff]  ;;  %v86_v4 = vld [vmem:[#allocation7 + $0x10] sm:$0xff]  ;;  %v87_v6 = vld [vmem:[#allocation7 + $0x18] sm:$0xff]  ;;  %vm127_vm1 = vcmask 261120   ;;  %v467_v35 = vmul.f32 0.001, %v84_v2 }
  0x4d   :  { %1660 = vmatprep.subr.bf16.mxu1 %v1963_v0  ;;  %1474 = vmatprep.mubr.msk.f32.mxu1 %vm1964_vm0, %v1965_v1  ;;  %v1655_v5 = vpack.c.bf16 %v85_v3, %v84_v2  ;;  %v2095_v7 = vld [vmem:[#allocation7 + $0x20] sm:$0xff]  ;;  %v2097_v8 = vld [vmem:[#allocation7 + $0x28] sm:$0xff]  ;;  %v2099_v9 = vld [vmem:[#allocation7 + $0x30] sm:$0xff]  ;;  %v1658_v11 = vpack.c.bf16 %v87_v6, %v86_v4  ;;  %v468_v36 = vmul.f32 0.001, %v85_v3  ;;  %s2372_s13 = sadd.s32 8, %s2500_s4 }
  0x4e   :  { %v2101_v10 = vld [vmem:[#allocation7 + $0x38] sm:$0xff]  ;;  %v1661_v12 = vpack.c.bf16 %v2097_v8, %v2095_v7  ;;  %v2109_v14 = vld [vmem:[#allocation7 + $0x40] sm:$0xff]  ;;  %v2111_v15 = vld [vmem:[#allocation7 + $0x48] sm:$0xff]  ;;  %v469_v41 = vmul.f32 0.001, %v86_v4  ;;  %vm985_vm6 = vcmask 64512  }
  0x4f   :  { %1656 = vmatpush3.bf16.msra.mxu0 %v1655_v5  ;;  %v1664_v13 = vpack.c.bf16 %v2101_v10, %v2099_v9  ;;  %v83_v16 = vld [vmem:[#allocation3] sm:$0xff]  ;;  %v1667_v17 = vpack.c.bf16 %v2111_v15, %v2109_v14  ;;  %v2120_v19 = vld [vmem:[#allocation7 + $0x58] sm:$0xff]  ;;  %v2127_v21 = vld [vmem:[#allocation7 + $0x60] sm:$0xff]  ;;  %v470_v42 = vmul.f32 0.001, %v87_v6  ;;  %s1233_s19 = ssub.s32 0, %s2372_s13 }
  0x50   :  { %1657 = vmatprep.subr.bf16.mxu0 %v1963_v0  ;;  %1662 = vmatpush3.bf16.msra.mxu1 %v1661_v12  ;;  %v2118_v18 = vld [vmem:[#allocation7 + $0x50] sm:$0xff]  ;;  %v2129_v22 = vld [vmem:[#allocation7 + $0x68] sm:$0xff]  ;;  %v2136_v25 = vld [vmem:[#allocation7 + $0x78] sm:$0xff]  ;;  %s1318_s20 = smin.u32 %s1233_s19, %s2372_s13  ;;  %p1232_p4 = scmp.lt.s32.totalorder %s2372_s13, 0 }
  0x51   :  { %1663 = vmatprep.subr.bf16.mxu1 %v1963_v0  ;;  %v1670_v20 = vpack.c.bf16 %v2120_v19, %v2118_v18  ;;  %v1673_v23 = vpack.c.bf16 %v2129_v22, %v2127_v21  ;;  %v2134_v24 = vld [vmem:[#allocation7 + $0x70] sm:$0xff]  ;;  %v2141_v27 = vld [vmem:[#allocation7 + $0x80] sm:$0xff]  ;;  %v2143_v28 = vld [vmem:[#allocation7 + $0x88] sm:$0xff]  ;;  %s1235_s21 = sand.u32 127, %s1318_s20   ;;  %s1967_s0 = smov [#allocation12]  }
  0x52   :  { %v1676_v26 = vpack.c.bf16 %v2136_v25, %v2134_v24  ;;  %v1679_v29 = vpack.c.bf16 %v2143_v28, %v2141_v27  ;;  %v2149_v30 = vld [vmem:[#allocation7 + $0x90] sm:$0xff]  ;;  %v2151_v31 = vld [vmem:[#allocation7 + $0x98] sm:$0xff]  ;;  %v356_v33 = vld [vmem:[#allocation9] sm:$0xff]  ;;  %s1247_s30 = sshll.u32 %s1967_s0, 4  ;;  %s1236_s22 = ssub.s32 0, %s1235_s21  ;;  %s1248_s30 = int_to_ptr.vmem [resolvable:$true] %s1247_s30 }
  0x53   :  { %1659 = vmatpush3.bf16.msra.mxu0 %v1658_v11  ;;  %v1682_v32 = vpack.c.bf16 %v2151_v31, %v2149_v30  ;;  %v357_v34 = vld [vmem:[#allocation9 + $0x8] sm:$0xff]  ;;  %v393_v37 = vmul.f32 0.999, %v356_v33  ;;  %v358_v39 = vld [vmem:[#allocation9 + $0x10] sm:$0xff]  ;;  %v359_v40 = vld [vmem:[#allocation9 + $0x18] sm:$0xff]  ;;  %s1891_s23 = scalar_lea.vmem %s1248_s30, 4736  ;;  %p1896_p6 = scmp.lt.s32.totalorder %s1248_s30, %s1248_s30 }
  0x54   :  { %1684 = vmatprep.subr.bf16.mxu0 %v1963_v0  ;;  %1665 = vmatpush3.bf16.msra.mxu1 %v1664_v13  ;;  %v394_v38 = vmul.f32 0.999, %v357_v34  ;;  %v395_v45 = vmul.f32 0.999, %v358_v39  ;;  %v396_v46 = vmul.f32 0.999, %v359_v40  ;;  %p1892_p5 = scmp.ne.s32.totalorder %s1248_s30, %s1891_s23  ;;  %p1897_p7 = scmp.lt.s32.totalorder %s1891_s23, %s1891_s23 }
  0x55   :  { %1666 = vmatprep.subr.bf16.mxu1 %v1963_v0  ;;  %v504_v43 = vadd.f32 %v467_v35, %v393_v37  ;;  %v2156_v51 = vld [vmem:[#allocation7 + $0xa0] sm:$0xff]  ;;  %v2158_v52 = vld [vmem:[#allocation7 + $0xa8] sm:$0xff]  ;;  %v2160_v53 = vld [vmem:[#allocation7 + $0xb0] sm:$0xff]  ;;  %v471_v37 = vmul.f32 0.001, %v2095_v7 }
  0x56   :  { %1440 = vmatmul.mubr.msk.f32.vlgmr.msra.gmra.mrb[0].mxu0 %vm127_vm1, %v83_v16  ;;  %v505_v44 = vadd.f32 %v468_v36, %v394_v38  ;;  %v506_v48 = vadd.f32 %v469_v41, %v395_v45  ;;  %v507_v49 = vadd.f32 %v470_v42, %v396_v46  ;;  %v1685_v54 = vpack.c.bf16 %v2158_v52, %v2156_v51  ;;  %v2164_v55 = vld [vmem:[#allocation7 + $0xb8] sm:$0xff]  ;;  %v2169_v57 = vld [vmem:[#allocation7 + $0xc0] sm:$0xff]  ;;  %v2171_v58 = vld [vmem:[#allocation7 + $0xc8] sm:$0xff]  ;;  %p1898_p8 = por %p1897_p7, %p1896_p6 }
  0x57   :  { %1509 = vmatprep.mubr.msk.f32.mxu0 %vm1964_vm0, %v1965_v1  ;;  %541 = vst [vmem:[#allocation12] sm:$0xff] %v504_v43  ;;  %v1688_v56 = vpack.c.bf16 %v2164_v55, %v2160_v53  ;;  %v1691_v59 = vpack.c.bf16 %v2171_v58, %v2169_v57  ;;  %v2176_v60 = vld [vmem:[#allocation7 + $0xd0] sm:$0xff]  ;;  %v2178_v61 = vld [vmem:[#allocation7 + $0xd8] sm:$0xff]  ;;  %v2183_v63 = vld [vmem:[#allocation7 + $0xe0] sm:$0xff]  ;;  %v472_v39 = vmul.f32 0.001, %v2097_v8 }
  0x58   :  { %1668 = vmatpush3.bf16.msra.mxu1 %v1667_v17  ;;  %542 = vst [vmem:[#allocation12 + $0x8] sm:$0xff] %v505_v44  ;;  %v1709_v47 = vpack.c.bf16 %v505_v44, %v504_v43  ;;  %543 = vst [vmem:[#allocation12 + $0x10] sm:$0xff] %v506_v48  ;;  %v1712_v50 = vpack.c.bf16 %v507_v49, %v506_v48  ;;  %1686 = vmatpush3.bf16.msra.mxu0 %v1685_v54  ;;  %v2185_v2 = vld [vmem:[#allocation7 + $0xe8] sm:$0xff]  ;;  %v2190_v4 = vld [vmem:[#allocation7 + $0xf0] sm:$0xff]  ;;  %v473_v8 = vmul.f32 0.001, %v2099_v9  ;;  %p1899_p9 = pnand %p1898_p8, %p1892_p5 }
  0x59   :  { %1669 = vmatprep.subr.bf16.mxu1 %v1963_v0  ;;  %544 = vst [vmem:[#allocation12 + $0x18] sm:$0xff] %v507_v49  ;;  %1687 = vmatprep.subr.bf16.mxu0 %v1963_v0  ;;  %v1694_v62 = vpack.c.bf16 %v2178_v61, %v2176_v60  ;;  %v1697_v3 = vpack.c.bf16 %v2185_v2, %v2183_v63  ;;  %v2192_v5 = vld [vmem:[#allocation7 + $0xf8] sm:$0xff]  ;;  %v2197_v11 = vld [vmem:[#allocation7 + $0x100] sm:$0xff]  ;;  %v2199_v12 = vld [vmem:[#allocation7 + $0x108] sm:$0xff]  ;;  %v474_v46 = vmul.f32 0.001, %v2101_v10 }
  0x5a   :  { %v1700_v6 = vpack.c.bf16 %v2192_v5, %v2190_v4  ;;  %v1703_v13 = vpack.c.bf16 %v2199_v12, %v2197_v11  ;;  %v1292_v16 = vld [vmem:[#allocation7 + $0x120] ss:$0 sm:$0xff]  ;;  %v360_v33 = vld [vmem:[#allocation9 + $0x20] sm:$0xff]  ;;  %v361_v35 = vld [vmem:[#allocation9 + $0x28] sm:$0xff]  ;;  %v476_v9 = vmul.f32 0.001, %v2111_v15 }
  0x5b   :  { %v397_v36 = vmul.f32 0.999, %v360_v33  ;;  %v398_v38 = vmul.f32 0.999, %v361_v35  ;;  %v362_v42 = vld [vmem:[#allocation9 + $0x30] sm:$0xff]  ;;  %v363_v43 = vld [vmem:[#allocation9 + $0x38] sm:$0xff] }
  0x5c   :  { %1671 = vmatpush3.bf16.msra.mxu1 %v1670_v20  ;;  %1689 = vmatpush3.bf16.msra.mxu0 %v1688_v56  ;;  %v399_v7 = vmul.f32 0.999, %v362_v42  ;;  %v400_v45 = vmul.f32 0.999, %v363_v43  ;;  %v364_v49 = vld [vmem:[#allocation9 + $0x40] sm:$0xff]  ;;  %v370_v42 = vld [vmem:[#allocation9 + $0x70] sm:$0xff] }
  0x5d   :  { %1672 = vmatprep.subr.bf16.mxu1 %v1963_v0  ;;  %1690 = vmatprep.subr.bf16.mxu0 %v1963_v0  ;;  %v2220_v40 = vadd.f32 %v471_v37, %v397_v36  ;;  %v2223_v41 = vadd.f32 %v472_v39, %v398_v38  ;;  %v401_v54 = vmul.f32 0.999, %v364_v49  ;;  %v368_v33 = vld [vmem:[#allocation9 + $0x60] sm:$0xff]  ;;  %v479_v37 = vmul.f32 0.001, %v2127_v21  ;;  %v371_v43 = vld [vmem:[#allocation9 + $0x78] sm:$0xff] }
  0x5e   :  { %v2233_v48 = vadd.f32 %v474_v46, %v400_v45  ;;  %v405_v35 = vmul.f32 0.999, %v368_v33  ;;  %v480_v38 = vmul.f32 0.001, %v2129_v22  ;;  %v408_v45 = vmul.f32 0.999, %v371_v43 }
  0x5f   :  { %545 = vst [vmem:[#allocation12 + $0x20] sm:$0xff] %v2220_v40  ;;  %546 = vst [vmem:[#allocation12 + $0x28] sm:$0xff] %v2223_v41  ;;  %v1715_v44 = vpack.c.bf16 %v2223_v41, %v2220_v40  ;;  %v482_v21 = vmul.f32 0.001, %v2136_v25  ;;  %v375_v33 = vld [vmem:[#allocation9 + $0x98] sm:$0xff] }
  0x60   :  { %1674 = vmatpush3.bf16.msra.mxu1 %v1673_v23  ;;  %1692 = vmatpush3.bf16.msra.mxu0 %v1691_v59  ;;  %v475_v59 = vmul.f32 0.001, %v2109_v14  ;;  %548 = vst [vmem:[#allocation12 + $0x38] sm:$0xff] %v2233_v48 }
  0x61   :  { %1675 = vmatprep.subr.bf16.mxu1 %v1963_v0  ;;  %1693 = vmatprep.subr.bf16.mxu0 %v1963_v0 }
  0x62   :  { %v2241_v10 = vadd.f32 %v475_v59, %v401_v54  ;;  %v466_v54 = vld [vmem:[#allocation7 + $0x120] sm:$0xff]  ;;  %v372_v59 = vld [vmem:[#allocation9 + $0x80] sm:$0xff] }
  0x64   :  { %1677 = vmatpush3.bf16.msra.mxu1 %v1676_v26  ;;  %1695 = vmatpush3.bf16.msra.mxu0 %v1694_v62  ;;  %v578_v26 = vld [vmem:[#allocation3 + $0x8] sm:$0xff]  ;;  %549 = vst [vmem:[#allocation12 + $0x40] sm:$0xff] %v2241_v10 }
  0x65   :  { %1678 = vmatprep.subr.bf16.mxu1 %v1963_v0  ;;  %1696 = vmatprep.subr.bf16.mxu0 %v1963_v0 }
  0x68   :  { %1680 = vmatpush3.bf16.msra.mxu1 %v1679_v29  ;;  %1698 = vmatpush3.bf16.msra.mxu0 %v1697_v3  ;;  %v2212_v29 = vld [vmem:[#allocation7 + $0x110] sm:$0xff] }
  0x69   :  { %1681 = vmatprep.subr.bf16.mxu1 %v1963_v0  ;;  %1699 = vmatprep.subr.bf16.mxu0 %v1963_v0 }
  0x6c   :  { %1683 = vmatpush3.bf16.msra.mxu1 %v1682_v32  ;;  %1701 = vmatpush3.bf16.msra.mxu0 %v1700_v6  ;;  %v2214_v32 = vld [vmem:[#allocation7 + $0x118] sm:$0xff] }
  0x6d   :  { %1708 = vmatprep.subr.bf16.mxu1 %v1963_v0  ;;  %1702 = vmatprep.subr.bf16.mxu0 %v1963_v0  ;;  %v1706_v34 = vpack.c.bf16 %v2214_v32, %v2212_v29  ;;  %v366_v6 = vld [vmem:[#allocation9 + $0x50] sm:$0xff] }
  0x70   :  { %1704 = vmatpush3.bf16.msra.mxu0 %v1703_v13  ;;  %v367_v13 = vld [vmem:[#allocation9 + $0x58] sm:$0xff] }
  0x71   :  { %1705 = vmatprep.subr.bf16.mxu0 %v1963_v0 }
  0x74   :  { %1707 = vmatpush3.bf16.msra.mxu0 %v1706_v34  ;;  %v369_v34 = vld [vmem:[#allocation9 + $0x68] sm:$0xff] }
  0x75   :  { %1714 = vmatprep.subr.bf16.mxu0 %v1963_v0  ;;  %v406_v36 = vmul.f32 0.999, %v369_v34 }
  0x77   :  { %v517_v39 = vadd.f32 %v480_v38, %v406_v36  ;;  %v485_v36 = vmul.f32 0.001, %v2149_v30  ;;  %v486_v38 = vmul.f32 0.001, %v2151_v31 }
  0x79   :  { %554 = vst [vmem:[#allocation12 + $0x68] sm:$0xff] %v517_v39 }
 0x129   :  { %v197_v17 = vpop.f32.mrb[0].mxu0 }
 0x12a   :  { %v198_v20 = vadd.f32 %v1292_v16, %v197_v17  ;;  %v1441_v23 = vpop.f32.mrb[1].mxu0  ;;  %v403_v16 = vmul.f32 0.999, %v366_v6  ;;  %v404_v17 = vmul.f32 0.999, %v367_v13 }
 0x12b   :  { %v478_v23 = vmul.f32 0.001, %v2120_v19  ;;  %v516_v19 = vadd.f32 %v479_v37, %v405_v35  ;;  %v503_v6 = vmul.f32 0.001, %v466_v54  ;;  %v409_v13 = vmul.f32 0.999, %v372_v59 }
 0x12c   :  { %1475 = vmatmul.mubr.f32.vlgmr.msra.gmra.mrb[0].mxu1 %v198_v20  ;;  %v477_v20 = vmul.f32 0.001, %v2118_v18  ;;  %v412_v35 = vmul.f32 0.999, %v375_v33  ;;  %v491_v59 = vmul.f32 0.001, %v2169_v57 }
 0x12d   :  { %1710 = vmatpush3.bf16.msra.mxu1 %v1709_v47  ;;  %1520 = vmatprep.mubr.msk.f32.mxu1 %vm1964_vm0, %v1965_v1  ;;  %v2231_v47 = vadd.f32 %v473_v8, %v399_v7  ;;  %553 = vst [vmem:[#allocation12 + $0x60] sm:$0xff] %v516_v19  ;;  %v407_v7 = vmul.f32 0.999, %v370_v42  ;;  %v481_v8 = vmul.f32 0.001, %v2134_v24  ;;  %v1727_v46 = vpack.c.bf16 %v517_v39, %v516_v19 }
 0x12e   :  { %1711 = vmatprep.subr.bf16.mxu1 %v1963_v0  ;;  %v2251_v15 = vadd.f32 %v477_v20, %v403_v16  ;;  %v484_v24 = vmul.f32 0.001, %v2143_v28  ;;  %v523_v19 = vadd.f32 %v486_v38, %v412_v35  ;;  %v1294_v39 = vld [vmem:[#allocation7 + $0x121] ss:$0 sm:$0xff] }
 0x12f   :  { %547 = vst [vmem:[#allocation12 + $0x30] sm:$0xff] %v2231_v47  ;;  %v1718_v62 = vpack.c.bf16 %v2233_v48, %v2231_v47  ;;  %v518_v49 = vadd.f32 %v481_v8, %v407_v7  ;;  %v377_v47 = vld [vmem:[#allocation9 + $0xa8] sm:$0xff]  ;;  %v489_v8 = vmul.f32 0.001, %v2160_v53  ;;  %v387_v38 = vld [vmem:[#allocation9 + $0xf8] sm:$0xff] }
 0x130   :  { %551 = vst [vmem:[#allocation12 + $0x50] sm:$0xff] %v2251_v15  ;;  %560 = vst [vmem:[#allocation12 + $0x98] sm:$0xff] %v523_v19 }
 0x131   :  { %1713 = vmatpush3.bf16.msra.mxu1 %v1712_v50  ;;  %v365_v50 = vld [vmem:[#allocation9 + $0x48] sm:$0xff]  ;;  %555 = vst [vmem:[#allocation12 + $0x70] sm:$0xff] %v518_v49 }
 0x132   :  { %1738 = vmatprep.subr.bf16.mxu1 %v1963_v0  ;;  %v402_v56 = vmul.f32 0.999, %v365_v50  ;;  %v392_v50 = vld [vmem:[#allocation9 + $0x120] sm:$0xff] }
 0x133   :  { %v429_v22 = vmul.f32 0.999, %v392_v50  ;;  %v490_v50 = vmul.f32 0.001, %v2164_v55  ;;  %v493_v55 = vmul.f32 0.001, %v2176_v60 }
 0x134   :  { %1521 = vmatmul.mubr.msk.f32.vlgmr.msra.gmra.mrb[2].mxu1 %vm127_vm1, %v578_v26  ;;  %v2243_v3 = vadd.f32 %v476_v9, %v402_v56  ;;  %v2253_v26 = vadd.f32 %v478_v23, %v404_v17  ;;  %v519_v56 = vadd.f32 %v482_v21, %v408_v45  ;;  %v373_v9 = vld [vmem:[#allocation9 + $0x88] sm:$0xff]  ;;  %v483_v17 = vmul.f32 0.001, %v2141_v27 }
 0x135   :  { %1590 = vmatprep.mubr.msk.f32.mxu1 %vm1964_vm0, %v1965_v1  ;;  %v410_v16 = vmul.f32 0.999, %v373_v9  ;;  %v540_v23 = vadd.f32 %v503_v6, %v429_v22  ;;  %v492_v9 = vmul.f32 0.001, %v2171_v58  ;;  %v494_v58 = vmul.f32 0.001, %v2178_v61 }
 0x136   :  { %550 = vst [vmem:[#allocation12 + $0x48] sm:$0xff] %v2243_v3  ;;  %v1721_v14 = vpack.c.bf16 %v2243_v3, %v2241_v10  ;;  %552 = vst [vmem:[#allocation12 + $0x58] sm:$0xff] %v2253_v26  ;;  %v1724_v18 = vpack.c.bf16 %v2253_v26, %v2251_v15  ;;  %v1730_v20 = vpack.c.bf16 %v519_v56, %v518_v49  ;;  %v374_v26 = vld [vmem:[#allocation9 + $0x90] sm:$0xff]  ;;  %v487_v10 = vmul.f32 0.001, %v2156_v51 }
 0x137   :  { %556 = vst [vmem:[#allocation12 + $0x78] sm:$0xff] %v519_v56  ;;  %v520_v15 = vadd.f32 %v483_v17, %v409_v13  ;;  %v521_v25 = vadd.f32 %v484_v24, %v410_v16  ;;  %577 = vst [vmem:[#allocation12 + $0x120] sm:$0xff] %v540_v23  ;;  %v411_v34 = vmul.f32 0.999, %v374_v26  ;;  %v488_v3 = vmul.f32 0.001, %v2158_v52 }
 0x138   :  { %v380_v56 = vld [vmem:[#allocation9 + $0xc0] sm:$0xff]  ;;  %v382_v13 = vld [vmem:[#allocation9 + $0xd0] sm:$0xff]  ;;  %v383_v16 = vld [vmem:[#allocation9 + $0xd8] sm:$0xff] }
 0x139   :  { %557 = vst [vmem:[#allocation12 + $0x80] sm:$0xff] %v520_v15  ;;  %558 = vst [vmem:[#allocation12 + $0x88] sm:$0xff] %v521_v25  ;;  %v1733_v37 = vpack.c.bf16 %v521_v25, %v520_v15  ;;  %v522_v27 = vadd.f32 %v485_v36, %v411_v34  ;;  %v417_v52 = vmul.f32 0.999, %v380_v56  ;;  %v419_v17 = vmul.f32 0.999, %v382_v13 }
 0x13a   :  { %v384_v15 = vld [vmem:[#allocation9 + $0xe0] sm:$0xff]  ;;  %v385_v25 = vld [vmem:[#allocation9 + $0xe8] sm:$0xff]  ;;  %v386_v26 = vld [vmem:[#allocation9 + $0xf0] sm:$0xff]  ;;  %v495_v36 = vmul.f32 0.001, %v2183_v63 }
 0x13b   :  { %559 = vst [vmem:[#allocation12 + $0x90] sm:$0xff] %v522_v27  ;;  %v1736_v28 = vpack.c.bf16 %v523_v19, %v522_v27  ;;  %v528_v23 = vadd.f32 %v491_v59, %v417_v52  ;;  %v530_v33 = vadd.f32 %v493_v55, %v419_v17  ;;  %v421_v34 = vmul.f32 0.999, %v384_v15  ;;  %v388_v19 = vld [vmem:[#allocation9 + $0x100] sm:$0xff]  ;;  %v2324_v13 = vld [vmem:[#allocation10 + $0x20] sm:$0xff] }
 0x13c   :  { %v422_v35 = vmul.f32 0.999, %v385_v25  ;;  %v423_v27 = vmul.f32 0.999, %v386_v26  ;;  %v2319_v52 = vld [vmem:[#allocation10 + $0x18] sm:$0xff]  ;;  %v2332_v25 = vld [vmem:[#allocation10 + $0x30] sm:$0xff] }
 0x13d   :  { %565 = vst [vmem:[#allocation12 + $0xc0] sm:$0xff] %v528_v23  ;;  %567 = vst [vmem:[#allocation12 + $0xd0] sm:$0xff] %v530_v33  ;;  %v532_v61 = vadd.f32 %v495_v36, %v421_v34  ;;  %v2334_v26 = vld [vmem:[#allocation10 + $0x38] sm:$0xff]  ;;  %v2339_v34 = vld [vmem:[#allocation10 + $0x40] sm:$0xff] }
 0x13e   :  { %v1296_v40 = vld [vmem:[#allocation12 + $0x120] ss:$0 sm:$0xff]  ;;  %v1299_v17 = vld [vmem:[#allocation12 + $0x122] ss:$0 sm:$0xff] }
 0x13f   :  { %569 = vst [vmem:[#allocation12 + $0xe0] sm:$0xff] %v532_v61 }
 0x1ff   :  { %v271_v42 = vpop.f32.mrb[0].mxu1 }
 0x200   :  { %v272_v43 = vadd.f32 %v1294_v39, %v271_v42  ;;  %v1476_v7 = vpop.f32.mrb[1].mxu1  ;;  %v497_v39 = vmul.f32 0.001, %v2190_v4  ;;  %v498_v42 = vmul.f32 0.001, %v2192_v5 }
 0x201   :  { %v389_v7 = vld [vmem:[#allocation9 + $0x108] sm:$0xff] }
 0x202   :  { %v275_v45 = vmax.f32 %v272_v43, 0.0 }
 0x204   :  { %1510 = vmatmul.mubr.f32.vlgmr.msra.gmra.mrb[2].mxu0 %v275_v45  ;;  %v425_v45 = vmul.f32 0.999, %v388_v19  ;;  %v2354_v19 = vld [vmem:[#allocation10 + $0x68] sm:$0xff] }
 0x205   :  { %1716 = vmatpush3.bf16.msra.mxu0 %v1715_v44  ;;  %1555 = vmatprep.mubr.msk.f32.mxu0 %vm1964_vm0, %v1965_v1  ;;  %v376_v44 = vld [vmem:[#allocation9 + $0xa0] sm:$0xff] }
 0x206   :  { %1717 = vmatprep.subr.bf16.mxu0 %v1963_v0  ;;  %v413_v48 = vmul.f32 0.999, %v376_v44 }
 0x207   :  { %v691_v30 = vpop.f32.mrb[2].mxu1 }
 0x208   :  { %v1522_v31 = vpop.f32.mrb[3].mxu1  ;;  %v692_v41 = vadd.f32 %v1296_v40, %v691_v30  ;;  %v499_v30 = vmul.f32 0.001, %v2197_v11  ;;  %v426_v40 = vmul.f32 0.999, %v389_v7 }
 0x209   :  { %1719 = vmatpush3.bf16.msra.mxu0 %v1718_v62  ;;  %v414_v62 = vmul.f32 0.999, %v377_v47 }
 0x20a   :  { %1720 = vmatprep.subr.bf16.mxu0 %v1963_v0  ;;  %v536_v4 = vadd.f32 %v499_v30, %v425_v45  ;;  %v944_v30 = vlaneseq }
 0x20b   :  { %v525_v54 = vadd.f32 %v488_v3, %v414_v62  ;;  %v391_v62 = vld [vmem:[#allocation9 + $0x118] sm:$0xff] }
 0x20c   :  { %573 = vst [vmem:[#allocation12 + $0x100] sm:$0xff] %v536_v4  ;;  %v428_v3 = vmul.f32 0.999, %v391_v62 }
 0x20d   :  { %1722 = vmatpush3.bf16.msra.mxu0 %v1721_v14  ;;  %v378_v14 = vld [vmem:[#allocation9 + $0xb0] sm:$0xff]  ;;  %562 = vst [vmem:[#allocation12 + $0xa8] sm:$0xff] %v525_v54 }
 0x20e   :  { %1723 = vmatprep.subr.bf16.mxu0 %v1963_v0  ;;  %v415_v21 = vmul.f32 0.999, %v378_v14  ;;  %v501_v14 = vmul.f32 0.001, %v2212_v29  ;;  %v2311_v29 = vld [vmem:[#allocation10] sm:$0xff] }
 0x210   :  { %v526_v51 = vadd.f32 %v489_v8, %v415_v21 }
 0x211   :  { %1725 = vmatpush3.bf16.msra.mxu0 %v1724_v18  ;;  %v379_v18 = vld [vmem:[#allocation9 + $0xb8] sm:$0xff] }
 0x212   :  { %1726 = vmatprep.subr.bf16.mxu0 %v1963_v0  ;;  %v416_v49 = vmul.f32 0.999, %v379_v18  ;;  %563 = vst [vmem:[#allocation12 + $0xb0] sm:$0xff] %v526_v51  ;;  %v502_v18 = vmul.f32 0.001, %v2214_v32  ;;  %v2313_v32 = vld [vmem:[#allocation10 + $0x8] sm:$0xff] }
 0x214   :  { %v527_v22 = vadd.f32 %v490_v50, %v416_v49 }
 0x215   :  { %1728 = vmatpush3.bf16.msra.mxu0 %v1727_v46  ;;  %v524_v46 = vadd.f32 %v487_v10, %v413_v48  ;;  %v390_v48 = vld [vmem:[#allocation9 + $0x110] sm:$0xff] }
 0x216   :  { %1729 = vmatprep.subr.bf16.mxu0 %v1963_v0  ;;  %564 = vst [vmem:[#allocation12 + $0xb8] sm:$0xff] %v527_v22  ;;  %v1742_v24 = vpack.c.bf16 %v527_v22, %v526_v51  ;;  %v427_v10 = vmul.f32 0.999, %v390_v48  ;;  %v2315_v51 = vld [vmem:[#allocation10 + $0x10] sm:$0xff]  ;;  %v1763_v22 = vpack.c.bf16 %v2313_v32, %v2311_v29 }
 0x217   :  { %561 = vst [vmem:[#allocation12 + $0xa0] sm:$0xff] %v524_v46  ;;  %v1739_v53 = vpack.c.bf16 %v525_v54, %v524_v46  ;;  %v539_v46 = vadd.f32 %v502_v18, %v428_v3  ;;  %v1298_v54 = vld [vmem:[#allocation12 + $0x121] ss:$0 sm:$0xff] }
 0x218   :  { %v538_v8 = vadd.f32 %v501_v14, %v427_v10 }
 0x219   :  { %1731 = vmatpush3.bf16.msra.mxu0 %v1730_v20  ;;  %v420_v20 = vmul.f32 0.999, %v383_v16  ;;  %1740 = vmatpush3.bf16.msra.mxu1 %v1739_v53  ;;  %576 = vst [vmem:[#allocation12 + $0x118] sm:$0xff] %v539_v46  ;;  %v2326_v16 = vld [vmem:[#allocation10 + $0x28] sm:$0xff] }
 0x21a   :  { %1732 = vmatprep.subr.bf16.mxu0 %v1963_v0  ;;  %1741 = vmatprep.subr.bf16.mxu1 %v1963_v0  ;;  %575 = vst [vmem:[#allocation12 + $0x110] sm:$0xff] %v538_v8  ;;  %v1760_v21 = vpack.c.bf16 %v539_v46, %v538_v8  ;;  %v1769_v53 = vpack.c.bf16 %v2326_v16, %v2324_v13 }
 0x21b   :  { %v531_v60 = vadd.f32 %v494_v58, %v420_v20  ;;  %v1295_v20 = vld [vmem:[#allocation7 + $0x122] ss:$0 sm:$0xff] }
 0x21d   :  { %1734 = vmatpush3.bf16.msra.mxu0 %v1733_v37  ;;  %v496_v37 = vmul.f32 0.001, %v2185_v2  ;;  %568 = vst [vmem:[#allocation12 + $0xd8] sm:$0xff] %v531_v60  ;;  %1743 = vmatpush3.bf16.msra.mxu1 %v1742_v24  ;;  %v534_v2 = vadd.f32 %v497_v39, %v423_v27  ;;  %v1748_v44 = vpack.c.bf16 %v531_v60, %v530_v33  ;;  %v2346_v60 = vld [vmem:[#allocation10 + $0x50] sm:$0xff]  ;;  %v2352_v27 = vld [vmem:[#allocation10 + $0x60] sm:$0xff]  ;;  %v2362_v39 = vld [vmem:[#allocation10 + $0x78] sm:$0xff] }
 0x21e   :  { %1735 = vmatprep.subr.bf16.mxu0 %v1963_v0  ;;  %1744 = vmatprep.subr.bf16.mxu1 %v1963_v0  ;;  %v1772_v33 = vpack.c.bf16 %v2334_v26, %v2332_v25 }
 0x21f   :  { %v533_v63 = vadd.f32 %v496_v37, %v422_v35  ;;  %571 = vst [vmem:[#allocation12 + $0xf0] sm:$0xff] %v534_v2  ;;  %v2341_v35 = vld [vmem:[#allocation10 + $0x48] sm:$0xff]  ;;  %v2348_v37 = vld [vmem:[#allocation10 + $0x58] sm:$0xff] }
 0x220   :  { %v1775_v36 = vpack.c.bf16 %v2341_v35, %v2339_v34 }
 0x221   :  { %1737 = vmatpush3.bf16.msra.mxu0 %v1736_v28  ;;  %v424_v28 = vmul.f32 0.999, %v387_v38  ;;  %570 = vst [vmem:[#allocation12 + $0xe8] sm:$0xff] %v533_v63  ;;  %v1751_v11 = vpack.c.bf16 %v533_v63, %v532_v61  ;;  %v1778_v38 = vpack.c.bf16 %v2348_v37, %v2346_v60  ;;  %v1781_v61 = vpack.c.bf16 %v2354_v19, %v2352_v27 }
 0x222   :  { %1762 = vmatprep.subr.bf16.mxu0 %v1963_v0 }
 0x223   :  { %v535_v31 = vadd.f32 %v498_v42, %v424_v28  ;;  %v2360_v28 = vld [vmem:[#allocation10 + $0x70] sm:$0xff] }
 0x224   :  { %1556 = vmatmul.mubr.f32.vlgmr.msra.gmra.mrb[4].mxu0 %v692_v41  ;;  %v500_v41 = vmul.f32 0.001, %v2199_v12  ;;  %v1784_v42 = vpack.c.bf16 %v2362_v39, %v2360_v28 }
 0x225   :  { %1625 = vmatprep.mubr.msk.f32.mxu0 %vm1964_vm0, %v1965_v1  ;;  %v381_v1 = vld [vmem:[#allocation9 + $0xc8] sm:$0xff]  ;;  %572 = vst [vmem:[#allocation12 + $0xf8] sm:$0xff] %v535_v31  ;;  %v1754_v47 = vpack.c.bf16 %v535_v31, %v534_v2  ;;  %1764 = vmatpush3.bf16.msra.mxu0 %v1763_v22 }
 0x226   :  { %v418_v6 = vmul.f32 0.999, %v381_v1  ;;  %v537_v5 = vadd.f32 %v500_v41, %v426_v40  ;;  %1765 = vmatprep.subr.bf16.mxu0 %v1963_v0  ;;  %v945_v40 = vshrl.u32 %v944_v30, 7  ;;  %v947_v41 = vand.u32 127, %v944_v30 }
 0x228   :  { %v529_v57 = vadd.f32 %v492_v9, %v418_v6  ;;  %574 = vst [vmem:[#allocation12 + $0x108] sm:$0xff] %v537_v5  ;;  %v1757_v12 = vpack.c.bf16 %v537_v5, %v536_v4  ;;  %v1766_v6 = vpack.c.bf16 %v2319_v52, %v2315_v51 }
 0x22a   :  { %566 = vst [vmem:[#allocation12 + $0xc8] sm:$0xff] %v529_v57  ;;  %v1745_v43 = vpack.c.bf16 %v529_v57, %v528_v23  ;;  %1767 = vmatpush3.bf16.msra.mxu0 %v1766_v6 }
 0x22b   :  { %1768 = vmatprep.subr.bf16.mxu0 %v1963_v0 }
 0x22c   :  { %1746 = vmatpush3.bf16.msra.mxu1 %v1745_v43 }
 0x22d   :  { %1747 = vmatprep.subr.bf16.mxu1 %v1963_v0 }
 0x22e   :  { %1770 = vmatpush3.bf16.msra.mxu0 %v1769_v53 }
 0x22f   :  { %1771 = vmatprep.subr.bf16.mxu0 %v1963_v0 }
 0x230   :  { %1749 = vmatpush3.bf16.msra.mxu1 %v1748_v44 }
 0x231   :  { %1750 = vmatprep.subr.bf16.mxu1 %v1963_v0 }
 0x232   :  { %1773 = vmatpush3.bf16.msra.mxu0 %v1772_v33 }
 0x233   :  { %1774 = vmatprep.subr.bf16.mxu0 %v1963_v0 }
 0x234   :  { %1752 = vmatpush3.bf16.msra.mxu1 %v1751_v11  ;;  %v1181_v11 = vstv %s2372_s13 }
 0x235   :  { %1753 = vmatprep.subr.bf16.mxu1 %v1963_v0  ;;  %vm1182_vm4 = vcmp.ge.s32.totalorder %v947_v41, %v1181_v11 }
 0x236   :  { %1776 = vmatpush3.bf16.msra.mxu0 %v1775_v36 }
 0x237   :  { %1777 = vmatprep.subr.bf16.mxu0 %v1963_v0 }
 0x238   :  { %1755 = vmatpush3.bf16.msra.mxu1 %v1754_v47  ;;  %v1966_v47 = vmov 1.0  }
 0x239   :  { %1756 = vmatprep.subr.bf16.mxu1 %v1963_v0 }
 0x23a   :  { %1779 = vmatpush3.bf16.msra.mxu0 %v1778_v38 }
 0x23b   :  { %1780 = vmatprep.subr.bf16.mxu0 %v1963_v0 }
 0x23c   :  { %1758 = vmatpush3.bf16.msra.mxu1 %v1757_v12 }
 0x23d   :  { %1759 = vmatprep.subr.bf16.mxu1 %v1963_v0 }
 0x23e   :  { %1782 = vmatpush3.bf16.msra.mxu0 %v1781_v61 }
 0x23f   :  { %1783 = vmatprep.subr.bf16.mxu0 %v1963_v0  ;;  %v948_v0 = vstv %s2500_s4 }
 0x240   :  { %1761 = vmatpush3.bf16.msra.mxu1 %v1760_v21  ;;  %v949_v4 = vadd.s32 %v948_v0, %v945_v40  ;;  %vm1179_vm3 = vcmp.lt.s32.totalorder %v947_v41, %v948_v0 }
 0x241   :  { %vm2375_vm5 = vmor %vm1179_vm3, %vm1182_vm4 }
 0x242   :  { %1785 = vmatpush3.bf16.msra.mxu0 %v1784_v42  ;;  %vm950_vm2 = vcmp.eq.s32.totalorder %v947_v41, %v949_v4 }
 0x243   :  { %1628 = vmatprep.subr.msk.mxu1 %vm950_vm2, %v1966_v47 }
 0x2d7   :  { %v346_v49 = vpop.f32.mrb[2].mxu0 }
 0x2d8   :  { %v1511_v50 = vpop.f32.mrb[3].mxu0  ;;  %v347_v57 = vadd.f32 %v1295_v20, %v346_v49 }
 0x2da   :  { %v350_v15 = vmul.f32 %v347_v57, %v347_v57 }
 0x2f7   :  { %v765_v56 = vpop.f32.mrb[4].mxu0 }
 0x2f8   :  { %v766_v1 = vadd.f32 %v1298_v54, %v765_v56  ;;  %v1557_v59 = vpop.f32.mrb[5].mxu0 }
 0x2fa   :  { %v769_v9 = vmax.f32 %v766_v1, 0.0 }
 0x2fc   :  { %1591 = vmatmul.mubr.f32.vlgmr.msra.gmra.mrb[4].mxu1 %v769_v9 }
 0x2fd   :  { %1629 = vmatpush3.msk.msra.mxu1 %vm950_vm2, %v1966_v47 }
 0x3cf   :  { %v840_v55 = vpop.f32.mrb[4].mxu1 }
 0x3d0   :  { %v841_v24 = vadd.f32 %v1299_v17, %v840_v55  ;;  %v1592_v23 = vpop.f32.mrb[5].mxu1 }
 0x3d2   :  { %v844_v58 = vmul.f32 %v841_v24, %v841_v24 }
 0x3d4   :  { %845 = vadd.xlane.f32.xlu0 %v844_v58 }
 0x3d8   :  { %351 = vadd.xlane.f32.xlu0 %v350_v15 }
 0x461   :  { %v846_v43 = vpop.xlane.xlu0 %845 }
 0x462   :  { %v847_v63 = vmax.f32 %v846_v43, 1e-24 }
 0x464   :  { %1799 = vrsqrt.f32 %v847_v63 }
 0x465   :  { %v352_v7 = vpop.xlane.xlu0 %351 }
 0x466   :  { %v353_v45 = vmax.f32 %v352_v7, 1e-24 }
 0x468   :  { %1801 = vrsqrt.f32 %v353_v45 }
 0x46e   :  { %v1800_v2 = vpop.eup %1799 }
 0x46f   :  { %v849_v31 = vmul.f32 %v1800_v2, %v841_v24 }
 0x471   :  { %953 = vxpose.xlu1.b32.start.end [1/1] (short) %v849_v31, 128 }
 0x472   :  { %v1802_v5 = vpop.eup %1801 }
 0x473   :  { %v355_v44 = vmul.f32 %v1802_v5, %v347_v57 }
 0x475   :  { %1626 = vmatmul.mubr.f32.vlgmr.msra.gmra.mrb[6].mxu0 %v355_v44  ;;  %v936_v12 = vmul.f32 %v849_v31, %v355_v44 }
 0x4d4   :  { %937 = vadd.xlane.f32.xlu1 %v936_v12 }
 0x4f1   :  { %v969_v62 = vpop.trf.xlu1 }
 0x4f2   :  { %1630 = vmatprep.mubr.msk.f32.mxu1 %vm985_vm6, %v969_v62 }
 0x4f5   :  { %v970_v10 = vpop.trf.xlu1 }
 0x4f6   :  { %1631 = vmatmul.mubr.msk.f32.vlgmr.msra.gmra.mrb[6].mxu1 %vm985_vm6, %v970_v10 }
 0x4f9   :  { %v971_v3 = vpop.trf.xlu1 }
 0x4fa   :  { %1633 = vmatprep.mubr.msk.f32.mxu1 %vm985_vm6, %v971_v3 }
 0x4fd   :  { %v972_v14 = vpop.trf.xlu1 }
 0x4fe   :  { %1634 = vmatmul.mubr.msk.f32.gmra.mrb[8].mxu1 %vm985_vm6, %v972_v14 }
 0x501   :  { %v973_v18 = vpop.trf.xlu1 }
 0x502   :  { %1636 = vmatprep.mubr.msk.f32.mxu1 %vm985_vm6, %v973_v18 }
 0x505   :  { %v974_v8 = vpop.trf.xlu1 }
 0x506   :  { %1637 = vmatmul.mubr.msk.f32.gmra.mrb[10].mxu1 %vm985_vm6, %v974_v8 }
 0x509   :  { %v975_v46 = vpop.trf.xlu1 }
 0x50a   :  { %1639 = vmatprep.mubr.msk.f32.mxu1 %vm985_vm6, %v975_v46 }
 0x50d   :  { %v976_v21 = vpop.trf.xlu1 }
 0x50e   :  { %1640 = vmatmul.mubr.msk.f32.gmra.mrb[12].mxu1 %vm985_vm6, %v976_v21 }
 0x511   :  { %v977_v49 = vpop.trf.xlu1 }
 0x512   :  { %1642 = vmatprep.mubr.msk.f32.mxu1 %vm985_vm6, %v977_v49 }
 0x515   :  { %v978_v50 = vpop.trf.xlu1 }
 0x516   :  { %1643 = vmatmul.mubr.msk.f32.gmra.mrb[14].mxu1 %vm985_vm6, %v978_v50 }
 0x519   :  { %v979_v54 = vpop.trf.xlu1 }
 0x51a   :  { %1645 = vmatprep.mubr.msk.f32.mxu1 %vm985_vm6, %v979_v54 }
 0x51d   :  { %v980_v56 = vpop.trf.xlu1 }
 0x51e   :  { %1646 = vmatmul.mubr.msk.f32.gmra.mrb[16].mxu1 %vm985_vm6, %v980_v56 }
 0x521   :  { %v981_v1 = vpop.trf.xlu1 }
 0x522   :  { %1648 = vmatprep.mubr.msk.f32.mxu1 %vm985_vm6, %v981_v1 }
 0x525   :  { %v982_v59 = vpop.trf.xlu1 }
 0x526   :  { %1649 = vmatmul.mubr.msk.f32.gmra.mrb[18].mxu1 %vm985_vm6, %v982_v59 }
 0x529   :  { %v983_v9 = vpop.trf.xlu1 }
 0x52a   :  { %1651 = vmatprep.mubr.msk.f32.mxu1 %vm985_vm6, %v983_v9 }
 0x52d   :  { %v984_v22 = vpop.trf.xlu1 }
 0x52e   :  { %1652 = vmatmul.mubr.msk.f32.gmra.mrb[20].mxu1 %vm985_vm6, %v984_v22 }
 0x548   :  { %v932_v6 = vpop.f32.mrb[6].mxu0 }
 0x549   :  { %v939_v53 = vmul.f32 5.0, %v932_v6  ;;  %v1627_v17 = vpop.f32.mrb[7].mxu0 }
 0x54b   :  { %940 = vst [vmem:[%s2501_s5] sm:$0xff] %v939_v53 }
 0x561   :  { %v938_v20 = vpop.xlane.xlu1 %937 }
 0x562   :  { %v941_v55 = vmul.f32 5.0, %v938_v20 }
 0x564   :  { %942 = vst [vmem:[%s2501_s5 + $0x8] sm:$0xff] %v941_v55 }
 0x565   :  { %1902 = shalt.err (!%p1899_p9)
}
 0x566   :  { %s1903_s26 = scalar_lea.hbm %s2502_s6, 4736 }
 0x567   :  { %p1904_p10 = scmp.ne.s32.totalorder %s2502_s6, %s1903_s26  ;;  %p1907_p11 = scmp.lt.u32.totalorder %s1903_s26, %s2502_s6 }
 0x569   :  { %p1909_p12 = pnand %p1907_p11, %p1904_p10 }
 0x56b   :  { %1912 = shalt.err (!%p1909_p12)
}
 0x56c   :  { %1253 = dma.vmem_to_hbm [thread:$0]  %s1248_s30, 4736, %s2502_s6, [#allocation5], %s1959_s17, %s1959_s17, %s1960_s18  }
 0x56d   :  { %s2508_s22 = smov (!%p1232_p4, %s1236_s22), %s1235_s21  ;;  %s1913_s10 = scalar_lea.hbm %s2504_s8, 16 }
 0x56e   :  { %1239 = sst [smem:[#allocation15]] %s2508_s22  ;;  %p1914_p13 = scmp.ne.s32.totalorder %s2504_s8, %s1913_s10 }
 0x56f   :  { %p1917_p0 = scmp.lt.u32.totalorder %s1913_s10, %s2504_s8 }
 0x571   :  { %p1919_p1 = pnand %p1917_p0, %p1914_p13 }
 0x573   :  { %1922 = shalt.err (!%p1919_p1)
}
 0x574   :  { %s1968_s15 = smov [#allocation15]  }
 0x575   :  { %1273 = dma.smem_to_hbm %s1968_s15, 16, %s2504_s8, [#allocation6]  }
 0x576   :  { %s1969_s8 = smov [#allocation13]  }
 0x577   :  { %s1259_s13 = sshll.u32 %s1969_s8, 4  ;;  %s1260_s13 = int_to_ptr.vmem [resolvable:$true] %s1259_s13 }
 0x578   :  { %s1923_s19 = scalar_lea.vmem %s1260_s13, 2048  ;;  %p1928_p3 = scmp.lt.s32.totalorder %s1260_s13, %s1260_s13 }
 0x579   :  { %p1924_p2 = scmp.ne.s32.totalorder %s1260_s13, %s1923_s19  ;;  %p1929_p4 = scmp.lt.s32.totalorder %s1923_s19, %s1923_s19 }
 0x57b   :  { %p1930_p5 = por %p1929_p4, %p1928_p3 }
 0x57d   :  { %p1931_p6 = pnand %p1930_p5, %p1924_p2 }
 0x5c9   :  { %v1632_v24 = vpop.f32.mrb[6].mxu1 }
 0x5ca   :  { %v1201_v23 = vsel %vm2375_vm5, %v2313_v32, %v1632_v24  ;;  %v1100_v57 = vpop.f32.mrb[7].mxu1 }
 0x5cb   :  { %1217 = vst [vmem:[#allocation13 + $0x8] sm:$0xff] %v1201_v23  ;;  %v1200_v58 = vsel %vm2375_vm5, %v2311_v29, %v1100_v57 }
 0x5cc   :  { %1216 = vst [vmem:[#allocation13] sm:$0xff] %v1200_v58 }
 0x5d1   :  { %v1635_v15 = vpop.f32.mrb[8].mxu1 }
 0x5d2   :  { %v1203_v33 = vsel %vm2375_vm5, %v2319_v52, %v1635_v15  ;;  %v1110_v36 = vpop.f32.mrb[9].mxu1 }
 0x5d3   :  { %1219 = vst [vmem:[#allocation13 + $0x18] sm:$0xff] %v1203_v33  ;;  %v1202_v38 = vsel %vm2375_vm5, %v2315_v51, %v1110_v36 }
 0x5d4   :  { %1218 = vst [vmem:[#allocation13 + $0x10] sm:$0xff] %v1202_v38 }
 0x5d9   :  { %v1638_v32 = vpop.f32.mrb[10].mxu1 }
 0x5da   :  { %v1205_v61 = vsel %vm2375_vm5, %v2326_v16, %v1638_v32  ;;  %v1120_v42 = vpop.f32.mrb[11].mxu1 }
 0x5db   :  { %1221 = vst [vmem:[#allocation13 + $0x28] sm:$0xff] %v1205_v61  ;;  %v1204_v29 = vsel %vm2375_vm5, %v2324_v13, %v1120_v42 }
 0x5dc   :  { %1220 = vst [vmem:[#allocation13 + $0x20] sm:$0xff] %v1204_v29 }
 0x5e1   :  { %v1641_v52 = vpop.f32.mrb[12].mxu1 }
 0x5e2   :  { %v1207_v43 = vsel %vm2375_vm5, %v2334_v26, %v1641_v52  ;;  %v1130_v63 = vpop.f32.mrb[13].mxu1 }
 0x5e3   :  { %1223 = vst [vmem:[#allocation13 + $0x38] sm:$0xff] %v1207_v43  ;;  %v1206_v51 = vsel %vm2375_vm5, %v2332_v25, %v1130_v63 }
 0x5e4   :  { %1222 = vst [vmem:[#allocation13 + $0x30] sm:$0xff] %v1206_v51 }
 0x5e9   :  { %v1644_v16 = vpop.f32.mrb[14].mxu1 }
 0x5ea   :  { %v1209_v7 = vsel %vm2375_vm5, %v2341_v35, %v1644_v16  ;;  %v1140_v45 = vpop.f32.mrb[15].mxu1 }
 0x5eb   :  { %1225 = vst [vmem:[#allocation13 + $0x48] sm:$0xff] %v1209_v7  ;;  %v1208_v13 = vsel %vm2375_vm5, %v2339_v34, %v1140_v45 }
 0x5ec   :  { %1224 = vst [vmem:[#allocation13 + $0x40] sm:$0xff] %v1208_v13 }
 0x5f1   :  { %v1647_v26 = vpop.f32.mrb[16].mxu1 }
 0x5f2   :  { %v1211_v30 = vsel %vm2375_vm5, %v2348_v37, %v1647_v26  ;;  %v1150_v2 = vpop.f32.mrb[17].mxu1 }
 0x5f3   :  { %1227 = vst [vmem:[#allocation13 + $0x58] sm:$0xff] %v1211_v30  ;;  %v1210_v25 = vsel %vm2375_vm5, %v2346_v60, %v1150_v2 }
 0x5f4   :  { %1226 = vst [vmem:[#allocation13 + $0x50] sm:$0xff] %v1210_v25 }
 0x5f9   :  { %v1650_v35 = vpop.f32.mrb[18].mxu1 }
 0x5fa   :  { %v1213_v31 = vsel %vm2375_vm5, %v2354_v19, %v1650_v35  ;;  %v1160_v40 = vpop.f32.mrb[19].mxu1 }
 0x5fb   :  { %1229 = vst [vmem:[#allocation13 + $0x68] sm:$0xff] %v1213_v31  ;;  %v1212_v34 = vsel %vm2375_vm5, %v2352_v27, %v1160_v40 }
 0x5fc   :  { %1228 = vst [vmem:[#allocation13 + $0x60] sm:$0xff] %v1212_v34 }
 0x601   :  { %v1653_v37 = vpop.f32.mrb[20].mxu1 }
 0x602   :  { %v1215_v60 = vsel %vm2375_vm5, %v2362_v39, %v1653_v37  ;;  %v1170_v0 = vpop.f32.mrb[21].mxu1 }
 0x603   :  { %1231 = vst [vmem:[#allocation13 + $0x78] sm:$0xff] %v1215_v60  ;;  %v1214_v19 = vsel %vm2375_vm5, %v2360_v28, %v1170_v0 }
 0x604   :  { %1230 = vst [vmem:[#allocation13 + $0x70] sm:$0xff] %v1214_v19 }
 0x605   :  { %1934 = shalt.err (!%p1931_p6)
}
 0x606   :  { %s1935_s0 = scalar_lea.hbm %s2503_s7, 2048 }
 0x607   :  { %p1936_p7 = scmp.ne.s32.totalorder %s2503_s7, %s1935_s0  ;;  %p1939_p8 = scmp.lt.u32.totalorder %s1935_s0, %s2503_s7 }
 0x609   :  { %p1941_p9 = pnand %p1939_p8, %p1936_p7 }
 0x60b   :  { %1944 = shalt.err (!%p1941_p9)
}
 0x60c   :  { %1265 = dma.vmem_to_hbm [thread:$0]  %s1260_s13, 2048, %s2503_s7, [#allocation14], %s1959_s17, %s1959_s17, %s1960_s18  }
 0x60d   :  { %1951 = dma.done.wait [#allocation5], 4736  }
 0x60e   :  { %1952 = vsyncadd [#allocation5], 4294962560 }
 0x60f   :  { %1953 = dma.done.wait [#allocation14], 2048  }
 0x610   :  { %1954 = vsyncadd [#allocation14], 4294965248 }
 0x611   :  { %1955 = dma.done.wait [#allocation6], 16  }
 0x612   :  { %1956 = vsyncadd [#allocation6], 4294967280 }
 0x613   :  { %1285 = sfence }
 0x614   :  { %1286 = vsyncpa [#allocation4], 1 }
 0x615   :  { %1287 = vsyncpa [#allocation8], 1 }
 0x616   :  { %1288 = vsyncpa [#allocation11], 1 }
 0x617   :  { %1289 = vsyncpa [#allocation5], 1 }
 0x618   :  { %1290 = vsyncpa [#allocation14], 1 }
 0x619   :  { %1291 = vsyncpa [#allocation6], 1 }

</bundles_post_ra>
